<compile_context>
chip_gen: v7x
topology: tpu7x:2x2x1
jax: 0.10.0
libtpu: 0.0.40
codegen_flags: <defaults>
</compile_context>

<pallas_src>
import jax
import jax.numpy as jnp
from jax.experimental import pallas as pl
from jax.experimental.pallas import tpu as pltpu


# ---------------- fused Pallas kernel ----------------

def _wsplin_fused_kernel(x_ref, we_ref, be_ref, w1_ref, b1_ref, w2_ref, b2_ref, o_ref):
    # --- FeatureExtractorNetwork (attention=False) ---
    # Global average pool over the flattened spatial axis (lane-axis reduce).
    pooled = jnp.mean(x_ref[...], axis=-1)                                # (bs, patches*C)
    # Per-patch backbone Linear(C -> nc), pre-folded into a block-diagonal matmul, so
    # the PyTorch `.view(bs, -1)` needs no in-kernel reshape/relayout.
    z = jnp.dot(pooled, we_ref[...],
                preferred_element_type=jnp.float32) + be_ref[...]          # (bs, D)
    # --- ClassifierNetwork: Linear -> ReLU -> Dropout(identity at eval) -> Linear ---
    h = jnp.dot(z, w1_ref[...], preferred_element_type=jnp.float32) + b1_ref[...]
    h = jnp.maximum(h, 0.0)                                                # ReLU
    o_ref[...] = jnp.dot(h, w2_ref[...],
                         preferred_element_type=jnp.float32) + b2_ref[...]  # (bs, nc)


# ---------------- wrapper ----------------

def wsplin_ip_forward(x, params):
    """x: (bs, patches, C, H, W) -> (bs, num_classes)."""
    bs, patches, C, H, W = x.shape
    num_classes = params["bb_w"].shape[1]

    # Fold the per-patch backbone head into one block-diagonal projection:
    #   z[b, p*nc + k] = sum_c mean_hw(x[b, p, c, :, :]) * bb_w[c, k] + bb_b[k]
    # (one-time weight prep in the wrapper; zeros in the block-diagonal don't change f32 sums)
    w_eff = jnp.kron(jnp.eye(patches, dtype=jnp.float32), params["bb_w"])  # (patches*C, patches*nc)
    b_eff = jnp.tile(params["bb_b"], (1, patches))                          # (1, patches*nc)

    # Adjacent-dim merges only -> free metadata reshape, lane-aligned HW=256 fast axis.
    xr = x.reshape(bs, patches * C, H * W)

    vmem = pl.BlockSpec(memory_space=pltpu.MemorySpace.VMEM)
    return pl.pallas_call(
        _wsplin_fused_kernel,
        out_shape=jax.ShapeDtypeStruct((bs, num_classes), jnp.float32),
        in_specs=[vmem] * 7,
        out_specs=vmem,
    )(xr, w_eff, b_eff, params["w1"], params["b1"], params["w2"], params["b2"])


# ---------------- deterministic param init (PyTorch nn.Linear-style uniform) ----------------

def _linear_init(kw, kb, fan_in, fan_out):
    lim = 1.0 / float(fan_in) ** 0.5
    w = jax.random.uniform(kw, (fan_in, fan_out), jnp.float32, -lim, lim)
    b = jax.random.uniform(kb, (1, fan_out), jnp.float32, -lim, lim)
    return w, b


if __name__ == "__main__":
    bs, patches, C, H, W = 2, 17, 4, 16, 16
    num_classes = 8
    D = num_classes * patches  # 136

    key = jax.random.PRNGKey(0)
    ks = jax.random.split(key, 7)
    x = jax.random.normal(ks[0], (bs, patches, C, H, W), jnp.float32)

    bb_w, bb_b = _linear_init(ks[1], ks[2], C, num_classes)   # synthetic backbone head
    w1, b1 = _linear_init(ks[3], ks[4], D, D)                 # cls_head Linear 1
    w2, b2 = _linear_init(ks[5], ks[6], D, num_classes)       # cls_head Linear 2
    params = dict(bb_w=bb_w, bb_b=bb_b, w1=w1, b1=b1, w2=w2, b2=b2)

    out = jax.block_until_ready(wsplin_ip_forward(x, params))
    assert out.shape == (bs, num_classes), out.shape
    assert out.dtype == jnp.float32

    # pure-JAX reference following the original PyTorch op order
    feats_ref = jnp.mean(x.reshape(bs * patches, C, H * W), axis=-1) @ bb_w + bb_b
    feats_ref = feats_ref.reshape(bs, -1)
    ref = jnp.maximum(feats_ref @ w1 + b1, 0.0) @ w2 + b2
    assert jnp.allclose(out, ref, atol=1e-4, rtol=1e-4), float(jnp.max(jnp.abs(out - ref)))

    print("KERNEL_OK")
</pallas_src>

<mosaic_0001>
module attributes {stable_mosaic.version = 11 : i64} {
  func.func @_wsplin_fused_kernel(%arg0: memref<2x68x256xf32, #tpu.memory_space<vmem>>, %arg1: memref<68x136xf32, #tpu.memory_space<vmem>>, %arg2: memref<1x136xf32, #tpu.memory_space<vmem>>, %arg3: memref<136x136xf32, #tpu.memory_space<vmem>>, %arg4: memref<1x136xf32, #tpu.memory_space<vmem>>, %arg5: memref<136x8xf32, #tpu.memory_space<vmem>>, %arg6: memref<1x8xf32, #tpu.memory_space<vmem>>, %arg7: memref<2x8xf32, #tpu.memory_space<vmem>>) attributes {dimension_semantics = [], scalar_prefetch = 0 : i64, scratch_operands = 0 : i64, tpu.core_type = #tpu.core_type<tc>} {
    %c0 = arith.constant 0 : index
    %c0_0 = arith.constant 0 : index
    %c0_1 = arith.constant 0 : index
    %0 = vector.load %arg0[%c0, %c0_0, %c0_1] : memref<2x68x256xf32, #tpu.memory_space<vmem>>, vector<2x68x256xf32>
    %cst = arith.constant dense<0.000000e+00> : vector<2x68xf32>
    %1 = vector.multi_reduction <add>, %0, %cst [2] : vector<2x68x256xf32> to vector<2x68xf32>
    %cst_2 = arith.constant 2.560000e+02 : f32
    %2 = vector.broadcast %cst_2 : f32 to vector<2x68xf32>
    %3 = arith.divf %1, %2 : vector<2x68xf32>
    %c0_3 = arith.constant 0 : index
    %c0_4 = arith.constant 0 : index
    %4 = vector.load %arg1[%c0_3, %c0_4] : memref<68x136xf32, #tpu.memory_space<vmem>>, vector<68x136xf32>
    %cst_5 = arith.constant dense<0.000000e+00> : vector<2x136xf32>
    %5 = tpu.matmul %3, %4, %cst_5 {dimension_numbers = #tpu.dot_dimension_numbers<[1], [0], [0], [1], [0, 0, 1, 1], [], []>} : vector<2x68xf32>, vector<68x136xf32>, vector<2x136xf32> -> vector<2x136xf32>
    %c0_6 = arith.constant 0 : index
    %c0_7 = arith.constant 0 : index
    %6 = vector.load %arg2[%c0_6, %c0_7] : memref<1x136xf32, #tpu.memory_space<vmem>>, vector<1x136xf32>
    %7 = vector.broadcast %6 : vector<1x136xf32> to vector<2x136xf32>
    %8 = arith.addf %5, %7 : vector<2x136xf32>
    %c0_8 = arith.constant 0 : index
    %c0_9 = arith.constant 0 : index
    %9 = vector.load %arg3[%c0_8, %c0_9] : memref<136x136xf32, #tpu.memory_space<vmem>>, vector<136x136xf32>
    %cst_10 = arith.constant dense<0.000000e+00> : vector<2x136xf32>
    %10 = tpu.matmul %8, %9, %cst_10 {dimension_numbers = #tpu.dot_dimension_numbers<[1], [0], [0], [1], [0, 0, 1, 1], [], []>} : vector<2x136xf32>, vector<136x136xf32>, vector<2x136xf32> -> vector<2x136xf32>
    %c0_11 = arith.constant 0 : index
    %c0_12 = arith.constant 0 : index
    %11 = vector.load %arg4[%c0_11, %c0_12] : memref<1x136xf32, #tpu.memory_space<vmem>>, vector<1x136xf32>
    %12 = vector.broadcast %11 : vector<1x136xf32> to vector<2x136xf32>
    %13 = arith.addf %10, %12 : vector<2x136xf32>
    %cst_13 = arith.constant 0.000000e+00 : f32
    %14 = vector.broadcast %cst_13 : f32 to vector<2x136xf32>
    %15 = arith.maximumf %13, %14 : vector<2x136xf32>
    %c0_14 = arith.constant 0 : index
    %c0_15 = arith.constant 0 : index
    %16 = vector.load %arg5[%c0_14, %c0_15] : memref<136x8xf32, #tpu.memory_space<vmem>>, vector<136x8xf32>
    %cst_16 = arith.constant dense<0.000000e+00> : vector<2x8xf32>
    %17 = tpu.matmul %15, %16, %cst_16 {dimension_numbers = #tpu.dot_dimension_numbers<[1], [0], [0], [1], [0, 0, 1, 1], [], []>} : vector<2x136xf32>, vector<136x8xf32>, vector<2x8xf32> -> vector<2x8xf32>
    %c0_17 = arith.constant 0 : index
    %c0_18 = arith.constant 0 : index
    %18 = vector.load %arg6[%c0_17, %c0_18] : memref<1x8xf32, #tpu.memory_space<vmem>>, vector<1x8xf32>
    %19 = vector.broadcast %18 : vector<1x8xf32> to vector<2x8xf32>
    %20 = arith.addf %17, %19 : vector<2x8xf32>
    %c0_19 = arith.constant 0 : index
    %c0_20 = arith.constant 0 : index
    %21 = vector.load %arg7[%c0_19, %c0_20] : memref<2x8xf32, #tpu.memory_space<vmem>>, vector<2x8xf32>
    tpu.vector_store %arg7[%c0_19, %c0_20], %20 {strides = array<i32>} : memref<2x8xf32, #tpu.memory_space<vmem>>, vector<2x8xf32>,
    return
  }
}

</mosaic_0001>

<bundles_post_ra>
// kernel: tpu_custom_call.1
= control target key start
LH: loop header
LB: loop body
LE: loop exit
PB: predicated region body
PF: predicated region fallthrough
CT: control target
= control target key end

     0   :  { %s1134_s0 = inlined_call_operand.vmem [shape: f32[2,68,256], index: 0, kind: input, shape index: {}]   ;;  %s1135_s1 = inlined_call_operand.vmem [shape: f32[68,136], index: 1, kind: input, shape index: {}]   ;;  %s1136_s2 = inlined_call_operand.vmem [shape: f32[1,136], index: 2, kind: input, shape index: {}]   ;;  %s1137_s3 = inlined_call_operand.vmem [shape: f32[136,136], index: 3, kind: input, shape index: {}]   ;;  %s1138_s4 = inlined_call_operand.vmem [shape: f32[1,136], index: 4, kind: input, shape index: {}]   ;;  %s1139_s5 = inlined_call_operand.vmem [shape: f32[136,8], index: 5, kind: input, shape index: {}]   ;;  %s1140_s6 = inlined_call_operand.vmem [shape: f32[1,8], index: 6, kind: input, shape index: {}]   ;;  %s1141_s7 = inlined_call_operand.hbm [shape: f32[2,8], index: 7, kind: output, shape index: {}]  }
   0x1   :  { %v45_v0 = vld [vmem:[%s1134_s0 + $0x90] sm:$0xff]  ;;  %v46_v1 = vld [vmem:[%s1134_s0 + $0x98] sm:$0xff]  ;;  %v27_v2 = vld [vmem:[%s1134_s0] sm:$0xff] }
   0x2   :  { %v93_v3 = vadd.f32 %v46_v1, %v45_v0  ;;  %v28_v4 = vld [vmem:[%s1134_s0 + $0x8] sm:$0xff]  ;;  %v47_v5 = vld [vmem:[%s1134_s0 + $0xa0] sm:$0xff]  ;;  %v29_v8 = vld [vmem:[%s1134_s0 + $0x10] sm:$0xff] }
   0x3   :  { %v48_v6 = vld [vmem:[%s1134_s0 + $0xa8] sm:$0xff]  ;;  %v63_v7 = vadd.f32 %v28_v4, %v27_v2  ;;  %v30_v9 = vld [vmem:[%s1134_s0 + $0x18] sm:$0xff]  ;;  %v49_v12 = vld [vmem:[%s1134_s0 + $0xb0] sm:$0xff] }
   0x4   :  { %94 = vadd.xlane.f32.xlu1 %v93_v3  ;;  %v96_v10 = vadd.f32 %v48_v6, %v47_v5  ;;  %v66_v11 = vadd.f32 %v30_v9, %v29_v8  ;;  %v50_v13 = vld [vmem:[%s1134_s0 + $0xb8] sm:$0xff]  ;;  %v31_v14 = vld [vmem:[%s1134_s0 + $0x20] sm:$0xff]  ;;  %v32_v15 = vld [vmem:[%s1134_s0 + $0x28] sm:$0xff] }
   0x5   :  { %64 = vadd.xlane.f32.xlu0 %v63_v7  ;;  %v99_v16 = vadd.f32 %v50_v13, %v49_v12  ;;  %v69_v17 = vadd.f32 %v32_v15, %v31_v14  ;;  %v51_v18 = vld [vmem:[%s1134_s0 + $0xc0] sm:$0xff]  ;;  %v52_v19 = vld [vmem:[%s1134_s0 + $0xc8] sm:$0xff]  ;;  %v33_v20 = vld [vmem:[%s1134_s0 + $0x30] sm:$0xff] }
   0x6   :  { %v34_v21 = vld [vmem:[%s1134_s0 + $0x38] sm:$0xff]  ;;  %v102_v22 = vadd.f32 %v52_v19, %v51_v18  ;;  %v53_v24 = vld [vmem:[%s1134_s0 + $0xd0] sm:$0xff] }
   0x7   :  { %v72_v23 = vadd.f32 %v34_v21, %v33_v20  ;;  %v54_v25 = vld [vmem:[%s1134_s0 + $0xd8] sm:$0xff] }
   0x8   :  { %97 = vadd.xlane.f32.xlu1 %v96_v10 }
   0x9   :  { %67 = vadd.xlane.f32.xlu0 %v66_v11 }
   0xc   :  { %100 = vadd.xlane.f32.xlu1 %v99_v16 }
   0xd   :  { %70 = vadd.xlane.f32.xlu0 %v69_v17 }
   0xe   :  { %12 = vsyncpa [#allocation3], 0  ;;  %v35_v26 = vld [vmem:[%s1134_s0 + $0x40] sm:$0xff]  ;;  %v36_v27 = vld [vmem:[%s1134_s0 + $0x48] sm:$0xff]  ;;  %v105_v28 = vadd.f32 %v54_v25, %v53_v24  ;;  %vm87_vm0 = vcmask 1043456   ;;  %v718_v20 = vmov 0.0  }
   0xf   :  { %v75_v29 = vadd.f32 %v36_v27, %v35_v26  ;;  %v55_v30 = vld [vmem:[%s1134_s0 + $0xe0] sm:$0xff]  ;;  %v56_v31 = vld [vmem:[%s1134_s0 + $0xe8] sm:$0xff]  ;;  %v37_v32 = vld [vmem:[%s1134_s0 + $0x50] sm:$0xff]  ;;  %370 = vmatprep.mubr.f32.mxu0 %v718_v20  ;;  %vm200_vm1 = vcmask 130112   ;;  %vm207_vm2 = vcmask 195712   ;;  %vm214_vm3 = vcmask 261312  }
  0x10   :  { %103 = vadd.xlane.f32.xlu1 %v102_v22  ;;  %v38_v33 = vld [vmem:[%s1134_s0 + $0x58] sm:$0xff]  ;;  %v108_v34 = vadd.f32 %v56_v31, %v55_v30  ;;  %v57_v36 = vld [vmem:[%s1134_s0 + $0xf0] sm:$0xff]  ;;  %v39_v38 = vld [vmem:[%s1134_s0 + $0x60] sm:$0xff]  ;;  %vm221_vm4 = vcmask 326912   ;;  %vm228_vm5 = vcmask 392512   ;;  %vm235_vm6 = vcmask 458112  }
  0x11   :  { %73 = vadd.xlane.f32.xlu0 %v72_v23  ;;  %v78_v35 = vadd.f32 %v38_v33, %v37_v32  ;;  %v58_v37 = vld [vmem:[%s1134_s0 + $0xf8] sm:$0xff]  ;;  %v40_v39 = vld [vmem:[%s1134_s0 + $0x68] sm:$0xff]  ;;  %v59_v42 = vld [vmem:[%s1134_s0 + $0x100] sm:$0xff]  ;;  %vm242_vm7 = vcmask 523712   ;;  %vm249_vm8 = vcmask 589312   ;;  %vm295_vm9 = vcmask 1041409  }
  0x12   :  { %v111_v40 = vadd.f32 %v58_v37, %v57_v36  ;;  %v81_v41 = vadd.f32 %v40_v39, %v39_v38  ;;  %v60_v43 = vld [vmem:[%s1134_s0 + $0x108] sm:$0xff]  ;;  %v41_v44 = vld [vmem:[%s1134_s0 + $0x70] sm:$0xff]  ;;  %v42_v45 = vld [vmem:[%s1134_s0 + $0x78] sm:$0xff]  ;;  %vm297_vm10 = vcmask 556032   ;;  %vm423_vm11 = vcmask 64512  }
  0x13   :  { %v61_v46 = vld [vmem:[%s1134_s0 + $0x110] sm:$0xf]  ;;  %v62_v47 = vld [vmem:[%s1134_s0 + $0x118] sm:$0xf]  ;;  %v43_v48 = vld [vmem:[%s1134_s0 + $0x80] sm:$0xf]  ;;  %v114_v50 = vadd.f32 %v60_v43, %v59_v42  ;;  %v84_v51 = vadd.f32 %v42_v45, %v41_v44 }
  0x14   :  { %106 = vadd.xlane.f32.xlu1 %v105_v28  ;;  %v44_v49 = vld [vmem:[%s1134_s0 + $0x88] sm:$0xf]  ;;  %v117_v52 = vsel %vm87_vm0, %v61_v46, 0.0  ;;  %v118_v53 = vsel %vm87_vm0, %v62_v47, 0.0  ;;  %v88_v54 = vsel %vm87_vm0, %v43_v48, 0.0  ;;  %v144_v59 = vld [vmem:[%s1135_s1 + $0x18] sm:$0xff] }
  0x15   :  { %76 = vadd.xlane.f32.xlu0 %v75_v29  ;;  %v89_v55 = vsel %vm87_vm0, %v44_v49, 0.0  ;;  %v119_v56 = vadd.f32 %v118_v53, %v117_v52  ;;  %v142_v58 = vld [vmem:[%s1135_s1 + $0x8] sm:$0xff]  ;;  %v141_v61 = vld [vmem:[%s1135_s1] sm:$0xff]  ;;  %v143_v62 = vld [vmem:[%s1135_s1 + $0x10] sm:$0xff]  ;;  %vm597_vm12 = vcmask 58368  }
  0x16   :  { %v90_v57 = vadd.f32 %v89_v55, %v88_v54  ;;  %v619_v60 = vpack.c.bf16 %v144_v59, %v142_v58  ;;  %v621_v63 = vpack.c.bf16 %v143_v62, %v141_v61  ;;  %v146_v0 = vld [vmem:[%s1135_s1 + $0x28] sm:$0xff]  ;;  %v148_v1 = vld [vmem:[%s1135_s1 + $0x38] sm:$0xff]  ;;  %v145_v3 = vld [vmem:[%s1135_s1 + $0x20] sm:$0xff] }
  0x17   :  { %v623_v2 = vpack.c.bf16 %v148_v1, %v146_v0  ;;  %v147_v4 = vld [vmem:[%s1135_s1 + $0x30] sm:$0xff]  ;;  %v150_v6 = vld [vmem:[%s1135_s1 + $0x48] sm:$0xff]  ;;  %v152_v7 = vld [vmem:[%s1135_s1 + $0x58] sm:$0xff] }
  0x18   :  { %109 = vadd.xlane.f32.xlu1 %v108_v34  ;;  %620 = vmatprep.subr.bf16.mxu0 %v619_v60  ;;  %v625_v5 = vpack.c.bf16 %v147_v4, %v145_v3  ;;  %v627_v8 = vpack.c.bf16 %v152_v7, %v150_v6  ;;  %v149_v9 = vld [vmem:[%s1135_s1 + $0x40] sm:$0xff]  ;;  %v151_v10 = vld [vmem:[%s1135_s1 + $0x50] sm:$0xff]  ;;  %v154_v12 = vld [vmem:[%s1135_s1 + $0x68] sm:$0xff] }
  0x19   :  { %79 = vadd.xlane.f32.xlu0 %v78_v35  ;;  %622 = vmatpush1.bf16.msra.mxu0 %v621_v63  ;;  %v629_v11 = vpack.c.bf16 %v151_v10, %v149_v9  ;;  %v156_v13 = vld [vmem:[%s1135_s1 + $0x78] sm:$0xff]  ;;  %v153_v15 = vld [vmem:[%s1135_s1 + $0x60] sm:$0xff]  ;;  %v155_v16 = vld [vmem:[%s1135_s1 + $0x70] sm:$0xff] }
  0x1a   :  { %624 = vmatprep.subr.bf16.mxu0 %v623_v2  ;;  %v631_v14 = vpack.c.bf16 %v156_v13, %v154_v12  ;;  %v633_v17 = vpack.c.bf16 %v155_v16, %v153_v15  ;;  %v158_v18 = vld [vmem:[%s1135_s1 + $0x88] sm:$0xf]  ;;  %v157_v19 = vld [vmem:[%s1135_s1 + $0x80] sm:$0xf]  ;;  %v380_v22 = vld [vmem:[%s1137_s3 + $0x18] sm:$0xff] }
  0x1b   :  { %v378_v21 = vld [vmem:[%s1137_s3 + $0x8] sm:$0xff]  ;;  %v377_v23 = vld [vmem:[%s1137_s3] sm:$0xff]  ;;  %v379_v25 = vld [vmem:[%s1137_s3 + $0x10] sm:$0xff] }
  0x1c   :  { %112 = vadd.xlane.f32.xlu1 %v111_v40  ;;  %v635_v24 = vpack.c.bf16 %v380_v22, %v378_v21  ;;  %v382_v26 = vld [vmem:[%s1137_s3 + $0x28] sm:$0xff]  ;;  %v384_v27 = vld [vmem:[%s1137_s3 + $0x38] sm:$0xff]  ;;  %v637_v28 = vpack.c.bf16 %v379_v25, %v377_v23  ;;  %v381_v30 = vld [vmem:[%s1137_s3 + $0x20] sm:$0xff] }
  0x1d   :  { %82 = vadd.xlane.f32.xlu0 %v81_v41  ;;  %626 = vmatpush1.bf16.msra.mxu0 %v625_v5  ;;  %v639_v29 = vpack.c.bf16 %v384_v27, %v382_v26  ;;  %v383_v31 = vld [vmem:[%s1137_s3 + $0x30] sm:$0xff]  ;;  %v386_v32 = vld [vmem:[%s1137_s3 + $0x48] sm:$0xff]  ;;  %v388_v33 = vld [vmem:[%s1137_s3 + $0x58] sm:$0xff] }
  0x1e   :  { %628 = vmatprep.subr.bf16.mxu0 %v627_v8  ;;  %636 = vmatprep.subr.bf16.mxu1 %v635_v24  ;;  %v641_v34 = vpack.c.bf16 %v383_v31, %v381_v30  ;;  %v643_v35 = vpack.c.bf16 %v388_v33, %v386_v32  ;;  %v385_v36 = vld [vmem:[%s1137_s3 + $0x40] sm:$0xff]  ;;  %v387_v37 = vld [vmem:[%s1137_s3 + $0x50] sm:$0xff]  ;;  %v390_v38 = vld [vmem:[%s1137_s3 + $0x68] sm:$0xff]  ;;  %v161_v8 = vlaneseq }
  0x1f   :  { %638 = vmatpush1.bf16.msra.mxu1 %v637_v28  ;;  %v392_v39 = vld [vmem:[%s1137_s3 + $0x78] sm:$0xff]  ;;  %v645_v40 = vpack.c.bf16 %v387_v37, %v385_v36  ;;  %v389_v42 = vld [vmem:[%s1137_s3 + $0x60] sm:$0xff]  ;;  %v391_v43 = vld [vmem:[%s1137_s3 + $0x70] sm:$0xff] }
  0x20   :  { %115 = vadd.xlane.f32.xlu1 %v114_v50  ;;  %640 = vmatprep.subr.bf16.mxu1 %v639_v29  ;;  %v647_v41 = vpack.c.bf16 %v392_v39, %v390_v38  ;;  %v394_v44 = vld [vmem:[%s1137_s3 + $0x88] sm:$0xff]  ;;  %v396_v45 = vld [vmem:[%s1137_s3 + $0x98] sm:$0xff]  ;;  %v649_v46 = vpack.c.bf16 %v391_v43, %v389_v42  ;;  %v393_v48 = vld [vmem:[%s1137_s3 + $0x80] sm:$0xff]  ;;  %v1020_v12 = vshrl.u32 %v161_v8, 7 }
  0x21   :  { %85 = vadd.xlane.f32.xlu0 %v84_v51  ;;  %630 = vmatpush1.bf16.msra.mxu0 %v629_v11  ;;  %v651_v47 = vpack.c.bf16 %v396_v45, %v394_v44  ;;  %v395_v49 = vld [vmem:[%s1137_s3 + $0x90] sm:$0xff]  ;;  %v398_v50 = vld [vmem:[%s1137_s3 + $0xa8] sm:$0xff]  ;;  %v400_v51 = vld [vmem:[%s1137_s3 + $0xb8] sm:$0xff]  ;;  %v190_v11 = vand.u32 127, %v161_v8 }
  0x22   :  { %632 = vmatprep.subr.bf16.mxu0 %v631_v14  ;;  %v653_v52 = vpack.c.bf16 %v395_v49, %v393_v48  ;;  %v655_v53 = vpack.c.bf16 %v400_v51, %v398_v50  ;;  %v397_v54 = vld [vmem:[%s1137_s3 + $0xa0] sm:$0xff]  ;;  %v399_v55 = vld [vmem:[%s1137_s3 + $0xb0] sm:$0xff]  ;;  %v406_v62 = vld [vmem:[%s1137_s3 + $0xe8] sm:$0xff] }
  0x23   :  { %642 = vmatpush1.bf16.msra.mxu1 %v641_v34  ;;  %v657_v58 = vpack.c.bf16 %v399_v55, %v397_v54  ;;  %v401_v60 = vld [vmem:[%s1137_s3 + $0xc0] sm:$0xff]  ;;  %v403_v61 = vld [vmem:[%s1137_s3 + $0xd0] sm:$0xff]  ;;  %v408_v63 = vld [vmem:[%s1137_s3 + $0xf8] sm:$0xff]  ;;  %v195_v13 = vadd.s32 4294967288, %v190_v11  ;;  %v202_v14 = vadd.s32 4294967280, %v190_v11  ;;  %v209_v16 = vadd.s32 4294967272, %v190_v11 }
  0x24   :  { %120 = vadd.xlane.f32.xlu1 %v119_v56  ;;  %644 = vmatprep.subr.bf16.mxu1 %v643_v35  ;;  %v402_v56 = vld [vmem:[%s1137_s3 + $0xc8] sm:$0xff]  ;;  %v661_v0 = vpack.c.bf16 %v403_v61, %v401_v60  ;;  %v663_v1 = vpack.c.bf16 %v408_v63, %v406_v62  ;;  %v193_v21 = vsub.s32 %v190_v11, %v1020_v12  ;;  %v230_v22 = vadd.s32 4294967248, %v190_v11 }
  0x25   :  { %91 = vadd.xlane.f32.xlu0 %v90_v57  ;;  %634 = vmatpush1.bf16.msra.mxu0 %v633_v17  ;;  %v404_v57 = vld [vmem:[%s1137_s3 + $0xd8] sm:$0xff]  ;;  %v216_v17 = vadd.s32 4294967264, %v190_v11  ;;  %v198_v23 = vsub.s32 %v195_v13, %v1020_v12  ;;  %v205_v24 = vsub.s32 %v202_v14, %v1020_v12  ;;  %v237_v26 = vadd.s32 4294967240, %v190_v11 }
  0x26   :  { %613 = vmatprep.subr.msk.mxu0 %vm87_vm0, %v158_v18  ;;  %v659_v59 = vpack.c.bf16 %v404_v57, %v402_v56  ;;  %v212_v27 = vsub.s32 %v209_v16, %v1020_v12  ;;  %v244_v32 = vadd.s32 4294967232, %v190_v11  ;;  %v233_v35 = vsub.s32 %v230_v22, %v1020_v12 }
  0x27   :  { %646 = vmatpush1.bf16.msra.mxu1 %v645_v40  ;;  %v219_v28 = vsub.s32 %v216_v17, %v1020_v12  ;;  %v240_v40 = vsub.s32 %v237_v26, %v1020_v12 }
  0x28   :  { %648 = vmatprep.subr.bf16.mxu1 %v647_v41  ;;  %v247_v48 = vsub.s32 %v244_v32, %v1020_v12  ;;  %v405_v32 = vld [vmem:[%s1137_s3 + $0xe0] sm:$0xff] }
  0x29   :  { %614 = vmatpush1.msk.msra.mxu0 %vm87_vm0, %v157_v19  ;;  %v223_v19 = vadd.s32 4294967256, %v190_v11 }
  0x2b   :  { %650 = vmatpush1.bf16.msra.mxu1 %v649_v46  ;;  %v226_v31 = vsub.s32 %v223_v19, %v1020_v12 }
  0x2c   :  { %652 = vmatprep.subr.bf16.mxu1 %v651_v47 }
  0x2f   :  { %654 = vmatpush1.bf16.msra.mxu1 %v653_v52 }
  0x30   :  { %656 = vmatprep.subr.bf16.mxu1 %v655_v53 }
  0x33   :  { %658 = vmatpush1.bf16.msra.mxu1 %v657_v58 }
  0x34   :  { %660 = vmatprep.subr.bf16.mxu1 %v659_v59 }
  0x37   :  { %662 = vmatpush1.bf16.msra.mxu1 %v661_v0 }
  0x38   :  { %664 = vmatprep.subr.bf16.mxu1 %v663_v1 }
  0x91   :  { %v95_v2 = vpop.xlane.xlu1 %94 }
  0x92   :  { %v65_v3 = vpop.xlane.xlu0 %64  ;;  %v132_v36 = vmul.f32 0.00390625, %v95_v2 }
  0x93   :  { %v123_v41 = vmul.f32 0.00390625, %v65_v3 }
  0x94   :  { %v254_v53 = vrot.slane %v132_v36, %v193_v21  ;;  %v409_v36 = vld [vmem:[%s1137_s3 + $0x100] sm:$0xff] }
  0x95   :  { %v98_v4 = vpop.xlane.xlu1 %97  ;;  %v194_v58 = vrot.slane %v123_v41, %v193_v21 }
  0x96   :  { %v68_v5 = vpop.xlane.xlu0 %67  ;;  %v133_v30 = vmul.f32 0.00390625, %v98_v4 }
  0x97   :  { %v124_v33 = vmul.f32 0.00390625, %v68_v5 }
  0x98   :  { %v258_v45 = vrot.slane %v133_v30, %v198_v23 }
  0x99   :  { %v101_v6 = vpop.xlane.xlu1 %100  ;;  %v199_v49 = vrot.slane %v124_v33, %v198_v23  ;;  %v407_v33 = vld [vmem:[%s1137_s3 + $0xf0] sm:$0xff] }
  0x9a   :  { %v71_v7 = vpop.xlane.xlu0 %70  ;;  %v134_v34 = vmul.f32 0.00390625, %v101_v6  ;;  %v259_v63 = vsel %vm200_vm1, %v258_v45, %v254_v53  ;;  %v505_v45 = vld [vmem:[%s1139_s5 + $0x28] sm:$0xff]  ;;  %v510_v53 = vld [vmem:[%s1139_s5 + $0x50] sm:$0xff] }
  0x9b   :  { %v125_v37 = vmul.f32 0.00390625, %v71_v7  ;;  %v201_v3 = vsel %vm200_vm1, %v199_v49, %v194_v58 }
  0x9c   :  { %v263_v50 = vrot.slane %v134_v34, %v205_v24  ;;  %v665_v34 = vpack.c.bf16 %v407_v33, %v405_v32 }
  0x9d   :  { %v104_v9 = vpop.xlane.xlu1 %103  ;;  %v206_v54 = vrot.slane %v125_v37, %v205_v24  ;;  %v500_v37 = vld [vmem:[%s1139_s5] sm:$0xff] }
  0x9e   :  { %v74_v10 = vpop.xlane.xlu0 %73  ;;  %v135_v38 = vmul.f32 0.00390625, %v104_v9  ;;  %v264_v4 = vsel %vm207_vm2, %v263_v50, %v259_v63  ;;  %666 = vmatpush1.bf16.msra.mxu1 %v665_v34  ;;  %v508_v50 = vld [vmem:[%s1139_s5 + $0x40] sm:$0xff] }
  0x9f   :  { %v126_v42 = vmul.f32 0.00390625, %v74_v10  ;;  %v208_v7 = vsel %vm207_vm2, %v206_v54, %v201_v3  ;;  %v511_v54 = vld [vmem:[%s1139_s5 + $0x58] sm:$0xff] }
  0xa0   :  { %v268_v55 = vrot.slane %v135_v38, %v212_v27  ;;  %v501_v38 = vld [vmem:[%s1139_s5 + $0x8] sm:$0xff] }
  0xa1   :  { %v107_v15 = vpop.xlane.xlu1 %106  ;;  %v213_v59 = vrot.slane %v126_v42, %v212_v27  ;;  %v668_v41 = vpack.c.bf16 %v501_v38, %v500_v37  ;;  %v503_v42 = vld [vmem:[%s1139_s5 + $0x18] sm:$0xff] }
  0xa2   :  { %v77_v18 = vpop.xlane.xlu0 %76  ;;  %v136_v43 = vmul.f32 0.00390625, %v107_v15  ;;  %v269_v8 = vsel %vm214_vm3, %v268_v55, %v264_v4  ;;  %v683_v55 = vpack.c.bf16 %v511_v54, %v510_v53  ;;  %v514_v4 = vld [vmem:[%s1139_s5 + $0x70] sm:$0xff] }
  0xa3   :  { %v127_v46 = vmul.f32 0.00390625, %v77_v18  ;;  %v215_v13 = vsel %vm214_vm3, %v213_v59, %v208_v7  ;;  %v167_v59 = vsub.s32 1, %v1020_v12  ;;  %v411_v7 = vld [vmem:[%s1138_s4] sm:$0x3] }
  0xa4   :  { %v273_v60 = vrot.slane %v136_v43, %v219_v28 }
  0xa5   :  { %v110_v25 = vpop.xlane.xlu1 %109  ;;  %v220_v0 = vrot.slane %v127_v46, %v219_v28 }
  0xa6   :  { %v80_v29 = vpop.xlane.xlu0 %79  ;;  %v137_v47 = vmul.f32 0.00390625, %v110_v25  ;;  %v274_v14 = vsel %vm221_vm4, %v273_v60, %v269_v8  ;;  %v159_v60 = vld [vmem:[%s1136_s2] sm:$0x3] }
  0xa7   :  { %v128_v51 = vmul.f32 0.00390625, %v80_v29  ;;  %v222_v18 = vsel %vm221_vm4, %v220_v0, %v215_v13 }
  0xa8   :  { %v278_v1 = vrot.slane %v137_v47, %v226_v31  ;;  %v506_v47 = vld [vmem:[%s1139_s5 + $0x30] sm:$0xff] }
  0xa9   :  { %v113_v39 = vpop.xlane.xlu1 %112  ;;  %v227_v5 = vrot.slane %v128_v51, %v226_v31  ;;  %v509_v51 = vld [vmem:[%s1139_s5 + $0x48] sm:$0xff] }
  0xaa   :  { %v83_v44 = vpop.xlane.xlu0 %82  ;;  %v138_v52 = vmul.f32 0.00390625, %v113_v39  ;;  %v279_v19 = vsel %vm228_vm5, %v278_v1, %v274_v14  ;;  %v502_v39 = vld [vmem:[%s1139_s5 + $0x10] sm:$0xff] }
  0xab   :  { %v129_v56 = vmul.f32 0.00390625, %v83_v44  ;;  %v229_v22 = vsel %vm228_vm5, %v227_v5, %v222_v18  ;;  %v671_v43 = vpack.c.bf16 %v503_v42, %v502_v39  ;;  %v504_v44 = vld [vmem:[%s1139_s5 + $0x20] sm:$0xff]  ;;  %v515_v5 = vld [vmem:[%s1139_s5 + $0x78] sm:$0xff] }
  0xac   :  { %v283_v6 = vrot.slane %v138_v52, %v233_v35  ;;  %v674_v46 = vpack.c.bf16 %v505_v45, %v504_v44  ;;  %v680_v52 = vpack.c.bf16 %v509_v51, %v508_v50 }
  0xad   :  { %v116_v57 = vpop.xlane.xlu1 %115  ;;  %v234_v9 = vrot.slane %v129_v56, %v233_v35  ;;  %v410_v35 = vld [vmem:[%s1137_s3 + $0x108] sm:$0xff]  ;;  %v512_v56 = vld [vmem:[%s1139_s5 + $0x60] sm:$0xff] }
  0xae   :  { %v139_v61 = vmul.f32 0.00390625, %v116_v57  ;;  %v86_v62 = vpop.xlane.xlu0 %85  ;;  %v284_v23 = vsel %vm235_vm6, %v283_v6, %v279_v19  ;;  %459 = vmatprep.subr.mxu1 %v410_v35  ;;  %v513_v57 = vld [vmem:[%s1139_s5 + $0x68] sm:$0xff]  ;;  %v689_v6 = vpack.c.bf16 %v515_v5, %v514_v4 }
  0xaf   :  { %v130_v2 = vmul.f32 0.00390625, %v86_v62  ;;  %v236_v25 = vsel %vm235_vm6, %v234_v9, %v229_v22  ;;  %460 = vmatpush1.msra.mxu1 %v409_v36  ;;  %v686_v58 = vpack.c.bf16 %v513_v57, %v512_v56  ;;  %v168_v62 = vrot.slane %v159_v60, %v167_v59 }
  0xb0   :  { %v288_v10 = vrot.slane %v139_v61, %v240_v40  ;;  %v163_v61 = vsub.s32 0, %v1020_v12  ;;  %v516_v12 = vld [vmem:[%s1139_s5 + $0x80] sm:$0xff]  ;;  %v420_v9 = vrot.slane %v411_v7, %v167_v59 }
  0xb1   :  { %v121_v11 = vpop.xlane.xlu1 %120  ;;  %v241_v15 = vrot.slane %v130_v2, %v240_v40  ;;  %v719_v40 = vmov 0.0|0.0  }
  0xb2   :  { %v140_v16 = vmul.f32 0.00390625, %v121_v11  ;;  %v92_v17 = vpop.xlane.xlu0 %91  ;;  %v289_v26 = vsel %vm242_vm7, %v288_v10, %v284_v23  ;;  %667 = vmatprep.subr.bf16.mxu0 %v719_v40  ;;  %v164_v63 = vrot.slane %v159_v60, %v163_v61  ;;  %v416_v8 = vrot.slane %v411_v7, %v163_v61 }
  0xb3   :  { %v131_v21 = vmul.f32 0.00390625, %v92_v17  ;;  %v243_v28 = vsel %vm242_vm7, %v241_v15, %v236_v25 }
  0xb4   :  { %v293_v24 = vrot.slane %v140_v16, %v247_v48 }
  0xb5   :  { %v248_v27 = vrot.slane %v131_v21, %v247_v48  ;;  %v507_v48 = vld [vmem:[%s1139_s5 + $0x38] sm:$0xff]  ;;  %s720_s5 = smov [#allocation2]  }
  0xb6   :  { %v294_v29 = vsel %vm249_vm8, %v293_v24, %v289_v26  ;;  %v677_v49 = vpack.c.bf16 %v507_v48, %v506_v47  ;;  %s605_s20 = sshll.u32 %s720_s5, 4  ;;  %s606_s20 = int_to_ptr.vmem [resolvable:$true] %s605_s20 }
  0xb7   :  { %v250_v30 = vsel %vm249_vm8, %v248_v27, %v243_v28  ;;  %s694_s4 = scalar_lea.vmem %s606_s20, 32  ;;  %p699_p1 = scmp.lt.s32.totalorder %s606_s20, %s606_s20 }
  0xb8   :  { %v296_v31 = vsel %vm295_vm9, %v294_v29, %v250_v30  ;;  %p695_p0 = scmp.ne.s32.totalorder %s606_s20, %s694_s4  ;;  %p700_p2 = scmp.lt.s32.totalorder %s694_s4, %s694_s4 }
  0xb9   :  { %615 = vmatmul.mubr.msk.f32.vlgmr.msra.gmra.mrb[0].mxu0 %vm297_vm10, %v296_v31 }
  0xba   :  { %669 = vmatpush1.bf16.msra.mxu0 %v668_v41  ;;  %p701_p3 = por %p700_p2, %p699_p1 }
  0xbb   :  { %670 = vmatprep.subr.bf16.mxu0 %v719_v40 }
  0xbc   :  { %p702_p4 = pnand %p701_p3, %p695_p0 }
  0xbe   :  { %672 = vmatpush1.bf16.msra.mxu0 %v671_v43 }
  0xbf   :  { %673 = vmatprep.subr.bf16.mxu0 %v719_v40 }
  0xc2   :  { %675 = vmatpush1.bf16.msra.mxu0 %v674_v46 }
  0xc3   :  { %676 = vmatprep.subr.bf16.mxu0 %v719_v40 }
  0xc6   :  { %678 = vmatpush1.bf16.msra.mxu0 %v677_v49 }
  0xc7   :  { %679 = vmatprep.subr.bf16.mxu0 %v719_v40 }
  0xca   :  { %681 = vmatpush1.bf16.msra.mxu0 %v680_v52 }
  0xcb   :  { %682 = vmatprep.subr.bf16.mxu0 %v719_v40 }
  0xce   :  { %684 = vmatpush1.bf16.msra.mxu0 %v683_v55 }
  0xcf   :  { %685 = vmatprep.subr.bf16.mxu0 %v719_v40 }
  0xd2   :  { %687 = vmatpush1.bf16.msra.mxu0 %v686_v58 }
  0xd3   :  { %688 = vmatprep.subr.bf16.mxu0 %v719_v40 }
  0xd6   :  { %690 = vmatpush1.bf16.msra.mxu0 %v689_v6 }
  0xd7   :  { %559 = vmatprep.subr.mxu0 %v718_v20  ;;  %v617_v20 = vld [vmem:[%s1140_s6] ss:$0 sm:$0xff] }
  0xda   :  { %560 = vmatpush1.msra.mxu0 %v516_v12 }
 0x18c   :  { %v372_v0 = vpop.f32.mrb[0].mxu0 }
 0x18d   :  { %v374_v1 = vpop.f32.mrb[1].mxu0  ;;  %v373_v3 = vadd.f32 %v372_v0, %v164_v63 }
 0x18e   :  { %v375_v2 = vadd.f32 %v374_v1, %v168_v62 }
 0x190   :  { %616 = vmatprep.mubr.msk.f32.mxu1 %vm423_vm11, %v375_v2 }
 0x191   :  { %492 = vmatmul.mubr.f32.vlgmr.msra.gmra.mrb[0].mxu1 %v373_v3 }
 0x264   :  { %v493_v10 = vpop.f32.mrb[0].mxu1 }
 0x265   :  { %v494_v11 = vadd.f32 %v493_v10, %v416_v8  ;;  %v495_v13 = vpop.f32.mrb[1].mxu1 }
 0x266   :  { %v496_v14 = vadd.f32 %v495_v13, %v420_v9 }
 0x267   :  { %v498_v16 = vmax.f32 %v494_v11, 0.0 }
 0x268   :  { %v499_v15 = vmax.f32 %v496_v14, 0.0 }
 0x26a   :  { %618 = vmatprep.mubr.msk.f32.mxu0 %vm423_vm11, %v499_v15 }
 0x26b   :  { %592 = vmatmul.mubr.f32.vlgmr.msra.gmra.mrb[2].mxu0 %v498_v16 }
 0x33e   :  { %v593_v17 = vpop.f32.mrb[2].mxu0 }
 0x33f   :  { %v594_v18 = vadd.f32 %v617_v20, %v593_v17  ;;  %v595_v19 = vpop.f32.mrb[3].mxu0 }
 0x341   :  { %598 = vst.msk [vmem:[#allocation2] sm:$0x3] %vm597_vm12, %v594_v18 }
 0x342   :  { %705 = shalt.err (!%p702_p4)
}
 0x343   :  { %s706_s22 = scalar_lea.hbm %s1141_s7, 32 }
 0x344   :  { %p707_p5 = scmp.ne.s32.totalorder %s1141_s7, %s706_s22  ;;  %p710_p6 = scmp.lt.u32.totalorder %s706_s22, %s1141_s7 }
 0x346   :  { %p712_p7 = pnand %p710_p6, %p707_p5 }
 0x348   :  { %715 = shalt.err (!%p712_p7)
}
 0x349   :  { %608 = dma.vmem_to_hbm [thread:$0]  %s606_s20, 32, %s1141_s7, [#allocation3]  }
 0x34a   :  { %716 = dma.done.wait [#allocation3], 32  }
 0x34b   :  { %717 = vsyncadd [#allocation3], 4294967264 }
 0x34c   :  { %612 = vsyncpa [#allocation3], 1 }

</bundles_post_ra>
